<compile_context>
chip_gen: v5e
topology: v5e:2x2
jax: 0.10.0
libtpu: 0.0.40
codegen_flags: <defaults>
</compile_context>

<pallas_src>
import math

import jax
import jax.numpy as jnp
from jax.experimental import pallas as pl
from jax.experimental.pallas import tpu as pltpu

BATCH = 2
SEQ = 8
EMBED = 32
NUM_CLASSES = 4
LN_EPS = 1e-5            # PyTorch nn.LayerNorm default
LANE = 128               # packed minor dim (= 4 * EMBED)
BS = BATCH * SEQ         # flattened rows (16)

assert 4 * EMBED == LANE, "packing below assumes embed_size == 32"
assert BS <= LANE and BATCH <= 8

# Row offsets inside the single packed parameter slab (N_ROWS, 128).
ROW_WQKVL = 0                     # [ 0:32]  (E, 4E) = [wq*s | wk | wv | wl]
ROW_WCLS = ROW_WQKVL + EMBED      # [32:64]  (E, 128) zero-padded classifier W
ROW_MASK = ROW_WCLS + EMBED       # [64:80]  (BS, BS) block-diag additive mask
ROW_POOL = ROW_MASK + BS          # [80:88]  (8, BS) mean-pool matrix (rows>=B zero)
ROW_VEC = ROW_POOL + 8            # [88:96]  biases / LN params / classifier bias
N_ROWS = ROW_VEC + 8              # 96


def _attn_classifier_kernel(x_ref, p_ref, out_ref):
    x2 = x_ref[...]                                        # (BS, E)

    w_qkvl = p_ref[ROW_WQKVL:ROW_WQKVL + EMBED, :]         # (E, 4E)
    w_cls = p_ref[ROW_WCLS:ROW_WCLS + EMBED, :]            # (E, 128)
    mask = p_ref[ROW_MASK:ROW_MASK + BS, 0:BS]             # (BS, BS)
    pool = p_ref[ROW_POOL:ROW_POOL + 8, 0:BS]              # (8, BS)
    b_qkvl = p_ref[ROW_VEC + 0:ROW_VEC + 1, :]             # (1, 4E)
    g1 = p_ref[ROW_VEC + 1:ROW_VEC + 2, 0:EMBED]
    beta1 = p_ref[ROW_VEC + 2:ROW_VEC + 3, 0:EMBED]
    g2 = p_ref[ROW_VEC + 3:ROW_VEC + 4, 0:EMBED]
    beta2 = p_ref[ROW_VEC + 4:ROW_VEC + 5, 0:EMBED]
    b_cls = p_ref[ROW_VEC + 5:ROW_VEC + 6, :]              # (1, 128)

    # ---- fused Q/K/V/(FF) projection: one lane-dense (BS,E)@(E,128) MXU push ----
    proj = jnp.dot(x2, w_qkvl, preferred_element_type=jnp.float32) + b_qkvl
    q = proj[:, 0 * EMBED:1 * EMBED]        # (BS, E); 1/sqrt(E) pre-folded into wq/bq
    k = proj[:, 1 * EMBED:2 * EMBED]
    v = proj[:, 2 * EMBED:3 * EMBED]
    # proj[:, 3E:4E] (= x @ wl + bl) is an unused by-product of the fused matmul.

    # ---- block-diagonal-masked 2-D attention (no reshapes, no batched einsums) ----
    scores = jax.lax.dot_general(q, k, (((1,), (1,)), ((), ())),
                                 preferred_element_type=jnp.float32) + mask
    # Scores are O(few) after the folded 1/sqrt(E) scale so exp cannot overflow in
    # f32; max-subtraction dropped (removes an XLU reduce from the serial chain).
    # Cross-batch entries underflow exp(-1e30) -> exactly 0.
    p = jnp.exp(scores)
    denom = jnp.sum(p, axis=-1, keepdims=True)
    # approx=False: approx reciprocal rel-err (~2^-12) is too close to the 1e-4 check.
    attn = p * pl.reciprocal(denom, approx=False)
    attn_out = jnp.dot(attn, v, preferred_element_type=jnp.float32)   # (BS, E)

    # ---- LayerNorm (biased variance, like PyTorch); independent reductions ----
    def layer_norm(h, gamma, beta):
        mu = jnp.mean(h, axis=-1, keepdims=True)
        var = jnp.mean(h * h, axis=-1, keepdims=True) - mu * mu
        return (h - mu) * jax.lax.rsqrt(var + LN_EPS) * gamma + beta

    h1 = layer_norm(x2 + attn_out, g1, beta1)

    # ---- shared feed-forward linear applied twice with ReLU in between ----
    wl = w_qkvl[:, 3 * EMBED:4 * EMBED]     # (E, E)
    bl = b_qkvl[:, 3 * EMBED:4 * EMBED]     # (1, E)
    t = jnp.dot(h1, wl, preferred_element_type=jnp.float32) + bl
    t = jnp.maximum(t, 0.0)
    t = jnp.dot(t, wl, preferred_element_type=jnp.float32) + bl

    h2 = layer_norm(x2 + t, g2, beta2)

    # ---- mean-pool as a tiny matmul (no relayout / sublane reduce), fused head ----
    pooled = jnp.dot(pool, h2, preferred_element_type=jnp.float32)         # (8, E)
    logits = jnp.dot(pooled, w_cls, preferred_element_type=jnp.float32) + b_cls
    out_ref[...] = logits.astype(out_ref.dtype)                            # (8, 128)


def init_params(key, embed_size=EMBED, num_classes=NUM_CLASSES):
    """Deterministic parameter init (PyTorch-Linear-like uniform ranges)."""
    keys = jax.random.split(key, 10)

    def lin(k, fan_in, fan_out):
        bound = 1.0 / math.sqrt(fan_in)
        kw, kb = jax.random.split(k)
        # stored as (in, out) so matmuls compute x @ W + b (== PyTorch x @ W.T + b)
        w = jax.random.uniform(kw, (fan_in, fan_out), jnp.float32, -bound, bound)
        b = jax.random.uniform(kb, (1, fan_out), jnp.float32, -bound, bound)
        return w, b

    wq, bq = lin(keys[0], embed_size, embed_size)
    wk, bk = lin(keys[1], embed_size, embed_size)
    wv, bv = lin(keys[2], embed_size, embed_size)
    wl, bl = lin(keys[3], embed_size, embed_size)
    wc, bc = lin(keys[4], embed_size, num_classes)
    gamma1 = jnp.ones((1, embed_size), jnp.float32)
    beta1 = jnp.zeros((1, embed_size), jnp.float32)
    gamma2 = jnp.ones((1, embed_size), jnp.float32)
    beta2 = jnp.zeros((1, embed_size), jnp.float32)
    return dict(wq=wq, bq=bq, wk=wk, bk=bk, wv=wv, bv=bv,
                wl=wl, bl=bl, g1=gamma1, beta1=beta1,
                g2=gamma2, beta2=beta2, wc=wc, bc=bc)


def pack_params(p):
    """One-time parameter transform: fuse/pad everything into ONE (96,128) slab."""
    scale = jnp.float32(1.0 / math.sqrt(EMBED))
    # (E, 128) = [wq*scale | wk | wv | wl]  (attention scale folded into Q)
    w_qkvl = jnp.concatenate(
        [p['wq'] * scale, p['wk'], p['wv'], p['wl']], axis=1).astype(jnp.float32)
    b_qkvl = jnp.concatenate(
        [p['bq'] * scale, p['bk'], p['bv'], p['bl']], axis=1).astype(jnp.float32)
    # classifier weight zero-padded to 128 output lanes
    w_cls = jnp.zeros((EMBED, LANE), jnp.float32).at[:, :NUM_CLASSES].set(p['wc'])

    # block-diagonal additive attention mask over flattened (B*S) rows
    batch_id = jnp.arange(BS) // SEQ
    same = batch_id[:, None] == batch_id[None, :]
    mask = jnp.where(same, 0.0, -1e30).astype(jnp.float32)          # (BS, BS)
    mask_rows = jnp.zeros((BS, LANE), jnp.float32).at[:, :BS].set(mask)

    # mean-pool matrix: P[b, i] = 1/S if flattened row i belongs to batch b
    pool = jnp.where(jnp.arange(BATCH)[:, None] == batch_id[None, :],
                     1.0 / SEQ, 0.0).astype(jnp.float32)            # (B, BS)
    pool_rows = jnp.zeros((8, LANE), jnp.float32).at[:BATCH, :BS].set(pool)

    vec_rows = jnp.zeros((8, LANE), jnp.float32)
    vec_rows = vec_rows.at[0:1, :].set(b_qkvl)
    vec_rows = vec_rows.at[1, :EMBED].set(p['g1'][0])
    vec_rows = vec_rows.at[2, :EMBED].set(p['beta1'][0])
    vec_rows = vec_rows.at[3, :EMBED].set(p['g2'][0])
    vec_rows = vec_rows.at[4, :EMBED].set(p['beta2'][0])
    vec_rows = vec_rows.at[5, :NUM_CLASSES].set(p['bc'][0])

    slab = jnp.concatenate([w_qkvl, w_cls, mask_rows, pool_rows, vec_rows], axis=0)
    assert slab.shape == (N_ROWS, LANE)
    return slab


@jax.jit
def self_attention_classifier(x, slab):
    B, S, E = x.shape
    x2 = x.reshape(B * S, E)                 # trivial leading-dim merge in XLA
    vmem = pl.BlockSpec(memory_space=pltpu.MemorySpace.VMEM)
    padded_logits = pl.pallas_call(
        _attn_classifier_kernel,
        out_shape=jax.ShapeDtypeStruct((8, LANE), jnp.float32),  # full f32 tile store
        in_specs=[vmem, vmem],
        out_specs=vmem,
    )(x2, slab)
    return padded_logits[:B, :NUM_CLASSES]


def _reference(x, p):
    """Pure-JAX reference for sanity checking the kernel."""
    def lin(h, w, b):
        return h @ w + b

    q = lin(x, p['wq'], p['bq'])
    k = lin(x, p['wk'], p['bk'])
    v = lin(x, p['wv'], p['bv'])
    s = jnp.einsum('bqe,bke->bqk', q, k) / math.sqrt(EMBED)
    a = jax.nn.softmax(s, axis=-1)
    o = jnp.einsum('bqk,bke->bqe', a, v)

    def ln(h, g, b):
        mu = jnp.mean(h, -1, keepdims=True)
        var = jnp.mean((h - mu) ** 2, -1, keepdims=True)
        return (h - mu) / jnp.sqrt(var + LN_EPS) * g + b

    h = ln(x + o, p['g1'], p['beta1'])
    t = lin(jnp.maximum(lin(h, p['wl'], p['bl']), 0.0), p['wl'], p['bl'])
    h2 = ln(x + t, p['g2'], p['beta2'])
    pooled = jnp.mean(h2, axis=1)
    return pooled @ p['wc'] + p['bc']


if __name__ == "__main__":
    key = jax.random.PRNGKey(0)
    kx, kp = jax.random.split(key)
    x = jax.random.normal(kx, (BATCH, SEQ, EMBED), jnp.float32)
    params = init_params(kp)
    slab = pack_params(params)            # one-time fuse/pad, outside the jit path

    logits = self_attention_classifier(x, slab)
    jax.block_until_ready(logits)

    ref = _reference(x, params)
    assert logits.shape == (BATCH, NUM_CLASSES)
    assert jnp.allclose(logits, ref, atol=1e-4, rtol=1e-4)
    print("KERNEL_OK")
</pallas_src>

<mosaic_0001>
module attributes {stable_mosaic.version = 11 : i64} {
  func.func @_attn_classifier_kernel(%arg0: memref<16x32xf32, #tpu.memory_space<vmem>>, %arg1: memref<96x128xf32, #tpu.memory_space<vmem>>, %arg2: memref<8x128xf32, #tpu.memory_space<vmem>>) attributes {dimension_semantics = [], scalar_prefetch = 0 : i64, scratch_operands = 0 : i64, tpu.core_type = #tpu.core_type<tc>} {
    %c0 = arith.constant 0 : index
    %c0_0 = arith.constant 0 : index
    %0 = vector.load %arg0[%c0, %c0_0] : memref<16x32xf32, #tpu.memory_space<vmem>>, vector<16x32xf32>
    %c0_1 = arith.constant 0 : index
    %c0_2 = arith.constant 0 : index
    %1 = vector.load %arg1[%c0_1, %c0_2] : memref<96x128xf32, #tpu.memory_space<vmem>>, vector<32x128xf32>
    %c32 = arith.constant 32 : index
    %c0_3 = arith.constant 0 : index
    %2 = vector.load %arg1[%c32, %c0_3] : memref<96x128xf32, #tpu.memory_space<vmem>>, vector<32x128xf32>
    %c64 = arith.constant 64 : index
    %c0_4 = arith.constant 0 : index
    %3 = vector.load %arg1[%c64, %c0_4] : memref<96x128xf32, #tpu.memory_space<vmem>>, vector<16x16xf32>
    %c80 = arith.constant 80 : index
    %c0_5 = arith.constant 0 : index
    %4 = vector.load %arg1[%c80, %c0_5] : memref<96x128xf32, #tpu.memory_space<vmem>>, vector<8x16xf32>
    %c88 = arith.constant 88 : index
    %c0_6 = arith.constant 0 : index
    %5 = vector.load %arg1[%c88, %c0_6] : memref<96x128xf32, #tpu.memory_space<vmem>>, vector<1x128xf32>
    %c89 = arith.constant 89 : index
    %c0_7 = arith.constant 0 : index
    %6 = vector.load %arg1[%c89, %c0_7] : memref<96x128xf32, #tpu.memory_space<vmem>>, vector<1x32xf32>
    %c90 = arith.constant 90 : index
    %c0_8 = arith.constant 0 : index
    %7 = vector.load %arg1[%c90, %c0_8] : memref<96x128xf32, #tpu.memory_space<vmem>>, vector<1x32xf32>
    %c91 = arith.constant 91 : index
    %c0_9 = arith.constant 0 : index
    %8 = vector.load %arg1[%c91, %c0_9] : memref<96x128xf32, #tpu.memory_space<vmem>>, vector<1x32xf32>
    %c92 = arith.constant 92 : index
    %c0_10 = arith.constant 0 : index
    %9 = vector.load %arg1[%c92, %c0_10] : memref<96x128xf32, #tpu.memory_space<vmem>>, vector<1x32xf32>
    %c93 = arith.constant 93 : index
    %c0_11 = arith.constant 0 : index
    %10 = vector.load %arg1[%c93, %c0_11] : memref<96x128xf32, #tpu.memory_space<vmem>>, vector<1x128xf32>
    %cst = arith.constant dense<0.000000e+00> : vector<16x128xf32>
    %11 = tpu.matmul %0, %1, %cst {dimension_numbers = #tpu.dot_dimension_numbers<[1], [0], [0], [1], [0, 0, 1, 1], [], []>} : vector<16x32xf32>, vector<32x128xf32>, vector<16x128xf32> -> vector<16x128xf32>
    %12 = vector.broadcast %5 : vector<1x128xf32> to vector<16x128xf32>
    %13 = arith.addf %11, %12 : vector<16x128xf32>
    %14 = vector.extract_strided_slice %13 {offsets = [0, 0], sizes = [16, 32], strides = [1, 1]} : vector<16x128xf32> to vector<16x32xf32>
    %15 = vector.extract_strided_slice %13 {offsets = [0, 32], sizes = [16, 32], strides = [1, 1]} : vector<16x128xf32> to vector<16x32xf32>
    %16 = vector.extract_strided_slice %13 {offsets = [0, 64], sizes = [16, 32], strides = [1, 1]} : vector<16x128xf32> to vector<16x32xf32>
    %cst_12 = arith.constant dense<0.000000e+00> : vector<16x16xf32>
    %17 = tpu.matmul %14, %15, %cst_12 {dimension_numbers = #tpu.dot_dimension_numbers<[1], [1], [0], [0], [0, 0, 1, 0], [], []>} : vector<16x32xf32>, vector<16x32xf32>, vector<16x16xf32> -> vector<16x16xf32>
    %18 = arith.addf %17, %3 : vector<16x16xf32>
    %19 = math.exp %18 : vector<16x16xf32>
    %cst_13 = arith.constant dense<0.000000e+00> : vector<16xf32>
    %20 = vector.multi_reduction <add>, %19, %cst_13 [1] : vector<16x16xf32> to vector<16xf32>
    %21 = vector.shape_cast %20 : vector<16xf32> to vector<16x1xf32>
    %22 = tpu.reciprocal %21 : vector<16x1xf32> -> vector<16x1xf32>
    %23 = vector.broadcast %22 : vector<16x1xf32> to vector<16x16xf32>
    %24 = arith.mulf %19, %23 : vector<16x16xf32>
    %cst_14 = arith.constant dense<0.000000e+00> : vector<16x32xf32>
    %25 = tpu.matmul %24, %16, %cst_14 {dimension_numbers = #tpu.dot_dimension_numbers<[1], [0], [0], [1], [0, 0, 1, 1], [], []>} : vector<16x16xf32>, vector<16x32xf32>, vector<16x32xf32> -> vector<16x32xf32>
    %26 = arith.addf %0, %25 : vector<16x32xf32>
    %cst_15 = arith.constant dense<0.000000e+00> : vector<16xf32>
    %27 = vector.multi_reduction <add>, %26, %cst_15 [1] : vector<16x32xf32> to vector<16xf32>
    %28 = vector.shape_cast %27 : vector<16xf32> to vector<16x1xf32>
    %cst_16 = arith.constant 3.200000e+01 : f32
    %29 = vector.broadcast %cst_16 : f32 to vector<16x1xf32>
    %30 = arith.divf %28, %29 : vector<16x1xf32>
    %31 = arith.mulf %26, %26 : vector<16x32xf32>
    %cst_17 = arith.constant dense<0.000000e+00> : vector<16xf32>
    %32 = vector.multi_reduction <add>, %31, %cst_17 [1] : vector<16x32xf32> to vector<16xf32>
    %33 = vector.shape_cast %32 : vector<16xf32> to vector<16x1xf32>
    %cst_18 = arith.constant 3.200000e+01 : f32
    %34 = vector.broadcast %cst_18 : f32 to vector<16x1xf32>
    %35 = arith.divf %33, %34 : vector<16x1xf32>
    %36 = arith.mulf %30, %30 : vector<16x1xf32>
    %37 = arith.subf %35, %36 : vector<16x1xf32>
    %38 = vector.broadcast %30 : vector<16x1xf32> to vector<16x32xf32>
    %39 = arith.subf %26, %38 : vector<16x32xf32>
    %cst_19 = arith.constant 9.99999974E-6 : f32
    %40 = vector.broadcast %cst_19 : f32 to vector<16x1xf32>
    %41 = arith.addf %37, %40 : vector<16x1xf32>
    %42 = math.rsqrt %41 : vector<16x1xf32>
    %43 = vector.broadcast %42 : vector<16x1xf32> to vector<16x32xf32>
    %44 = arith.mulf %39, %43 : vector<16x32xf32>
    %45 = vector.broadcast %6 : vector<1x32xf32> to vector<16x32xf32>
    %46 = arith.mulf %44, %45 : vector<16x32xf32>
    %47 = vector.broadcast %7 : vector<1x32xf32> to vector<16x32xf32>
    %48 = arith.addf %46, %47 : vector<16x32xf32>
    %49 = vector.extract_strided_slice %1 {offsets = [0, 96], sizes = [32, 32], strides = [1, 1]} : vector<32x128xf32> to vector<32x32xf32>
    %50 = vector.extract_strided_slice %5 {offsets = [0, 96], sizes = [1, 32], strides = [1, 1]} : vector<1x128xf32> to vector<1x32xf32>
    %cst_20 = arith.constant dense<0.000000e+00> : vector<16x32xf32>
    %51 = tpu.matmul %48, %49, %cst_20 {dimension_numbers = #tpu.dot_dimension_numbers<[1], [0], [0], [1], [0, 0, 1, 1], [], []>} : vector<16x32xf32>, vector<32x32xf32>, vector<16x32xf32> -> vector<16x32xf32>
    %52 = vector.broadcast %50 : vector<1x32xf32> to vector<16x32xf32>
    %53 = arith.addf %51, %52 : vector<16x32xf32>
    %cst_21 = arith.constant 0.000000e+00 : f32
    %54 = vector.broadcast %cst_21 : f32 to vector<16x32xf32>
    %55 = arith.maximumf %53, %54 : vector<16x32xf32>
    %cst_22 = arith.constant dense<0.000000e+00> : vector<16x32xf32>
    %56 = tpu.matmul %55, %49, %cst_22 {dimension_numbers = #tpu.dot_dimension_numbers<[1], [0], [0], [1], [0, 0, 1, 1], [], []>} : vector<16x32xf32>, vector<32x32xf32>, vector<16x32xf32> -> vector<16x32xf32>
    %57 = vector.broadcast %50 : vector<1x32xf32> to vector<16x32xf32>
    %58 = arith.addf %56, %57 : vector<16x32xf32>
    %59 = arith.addf %0, %58 : vector<16x32xf32>
    %cst_23 = arith.constant dense<0.000000e+00> : vector<16xf32>
    %60 = vector.multi_reduction <add>, %59, %cst_23 [1] : vector<16x32xf32> to vector<16xf32>
    %61 = vector.shape_cast %60 : vector<16xf32> to vector<16x1xf32>
    %cst_24 = arith.constant 3.200000e+01 : f32
    %62 = vector.broadcast %cst_24 : f32 to vector<16x1xf32>
    %63 = arith.divf %61, %62 : vector<16x1xf32>
    %64 = arith.mulf %59, %59 : vector<16x32xf32>
    %cst_25 = arith.constant dense<0.000000e+00> : vector<16xf32>
    %65 = vector.multi_reduction <add>, %64, %cst_25 [1] : vector<16x32xf32> to vector<16xf32>
    %66 = vector.shape_cast %65 : vector<16xf32> to vector<16x1xf32>
    %cst_26 = arith.constant 3.200000e+01 : f32
    %67 = vector.broadcast %cst_26 : f32 to vector<16x1xf32>
    %68 = arith.divf %66, %67 : vector<16x1xf32>
    %69 = arith.mulf %63, %63 : vector<16x1xf32>
    %70 = arith.subf %68, %69 : vector<16x1xf32>
    %71 = vector.broadcast %63 : vector<16x1xf32> to vector<16x32xf32>
    %72 = arith.subf %59, %71 : vector<16x32xf32>
    %cst_27 = arith.constant 9.99999974E-6 : f32
    %73 = vector.broadcast %cst_27 : f32 to vector<16x1xf32>
    %74 = arith.addf %70, %73 : vector<16x1xf32>
    %75 = math.rsqrt %74 : vector<16x1xf32>
    %76 = vector.broadcast %75 : vector<16x1xf32> to vector<16x32xf32>
    %77 = arith.mulf %72, %76 : vector<16x32xf32>
    %78 = vector.broadcast %8 : vector<1x32xf32> to vector<16x32xf32>
    %79 = arith.mulf %77, %78 : vector<16x32xf32>
    %80 = vector.broadcast %9 : vector<1x32xf32> to vector<16x32xf32>
    %81 = arith.addf %79, %80 : vector<16x32xf32>
    %cst_28 = arith.constant dense<0.000000e+00> : vector<8x32xf32>
    %82 = tpu.matmul %4, %81, %cst_28 {dimension_numbers = #tpu.dot_dimension_numbers<[1], [0], [0], [1], [0, 0, 1, 1], [], []>} : vector<8x16xf32>, vector<16x32xf32>, vector<8x32xf32> -> vector<8x32xf32>
    %cst_29 = arith.constant dense<0.000000e+00> : vector<8x128xf32>
    %83 = tpu.matmul %82, %2, %cst_29 {dimension_numbers = #tpu.dot_dimension_numbers<[1], [0], [0], [1], [0, 0, 1, 1], [], []>} : vector<8x32xf32>, vector<32x128xf32>, vector<8x128xf32> -> vector<8x128xf32>
    %84 = vector.broadcast %10 : vector<1x128xf32> to vector<8x128xf32>
    %85 = arith.addf %83, %84 : vector<8x128xf32>
    %c0_30 = arith.constant 0 : index
    %c0_31 = arith.constant 0 : index
    %86 = vector.load %arg2[%c0_30, %c0_31] : memref<8x128xf32, #tpu.memory_space<vmem>>, vector<8x128xf32>
    tpu.vector_store %arg2[%c0_30, %c0_31], %85 {strides = array<i32>} : memref<8x128xf32, #tpu.memory_space<vmem>>, vector<8x128xf32>,
    return
  }
}

</mosaic_0001>

<bundles_post_ra>
// kernel: self_attention_classifier.1
= control target key start
LH: loop header
LB: loop body
LE: loop exit
PB: predicated region body
PF: predicated region fallthrough
CT: control target
= control target key end

     0   :  { %7 = vsyncpa [#allocation3], 0  ;;  %s683_s0 = inlined_call_operand.hbm [shape: f32[16,32], index: 0, kind: input, shape index: {}]   ;;  %s684_s1 = inlined_call_operand.hbm [shape: f32[96,128], index: 1, kind: input, shape index: {}]   ;;  %s685_s2 = inlined_call_operand.vmem [shape: f32[8,128], index: 2, kind: output, shape index: {}]  }
   0x1   :  { %s13_s11 = sshll.u32 %s683_s0, 4  ;;  %s14_s11 = int_to_ptr.hbm [resolvable:$true] %s13_s11 }
   0x2   :  { %8 = vsyncpa [#allocation5], 0  ;;  %s574_s12 = smov [#allocation2]   ;;  %s26_s16 = sshll.u32 %s684_s1, 4  ;;  %s27_s16 = int_to_ptr.hbm [resolvable:$true] %s26_s16 }
   0x3   :  { %s15_s13 = sshll.u32 %s574_s12, 4  ;;  %s575_s17 = smov 128   ;;  %s16_s13 = int_to_ptr.vmem [resolvable:$true] %s15_s13 }
   0x4   :  { %s576_s18 = smov 8   ;;  %s577_s19 = smov [#allocation4]  }
   0x5   :  { %21 = dma.hbm_to_vmem [thread:$0]  %s14_s11, 256, %s16_s13, [#allocation3], %s575_s17, %s575_s17, %s576_s18  }
   0x6   :  { %s28_s20 = sshll.u32 %s577_s19, 4  ;;  %s29_s20 = int_to_ptr.vmem [resolvable:$true] %s28_s20 }
   0x7   :  { %34 = dma.hbm_to_vmem [thread:$0]  %s27_s16, 1536, %s29_s20, [#allocation5], %s575_s17, %s575_s17, %s576_s18  }
   0x8   :  { %570 = dma.done.wait [#allocation3], 256  }
   0x9   :  { %571 = vsyncadd [#allocation3], 4294967040 }
   0xa   :  { %572 = dma.done.wait [#allocation5], 1536  }
   0xb   :  { %573 = vsyncadd [#allocation5], 4294965760  ;;  %v603_v0 = vld [vmem:[#allocation4 + $0x18] sm:$0xff]  ;;  %v605_v1 = vld [vmem:[#allocation4 + $0x10] sm:$0xff]  ;;  %vm63_vm0 = vcmask 261120   ;;  %s578_s0 = smov 96  }
   0xc   :  { %82 = vmatpush.msra.mxu0 %v603_v0  ;;  %v488_v2 = vpack.i.bf16 %v605_v1, %v603_v0  ;;  %v610_v3 = vld [vmem:[#allocation4 + $0x8] sm:$0xff]  ;;  %v612_v4 = vld [vmem:[#allocation4] sm:$0xff]  ;;  %v618_v6 = vld [vmem:[#allocation2] sm:$0xff]  ;;  %s579_s1 = smov 64   ;;  %vm134_vm1 = vcmask 130048   ;;  %s580_s21 = smov 32  }
   0xd   :  { %v493_v5 = vpack.i.bf16 %v612_v4, %v610_v3  ;;  %v623_v7 = vld [vmem:[#allocation2 + $0x8] sm:$0xff]  ;;  %v53_v19 = vld [vmem:[#allocation4 + $0x40] sm:$0xff]  ;;  %v54_v23 = vld [vmem:[#allocation4 + $0x48] sm:$0xff] }
   0xe   :  { %83 = vmatpush.msra.mxu0 %v605_v1  ;;  %v627_v9 = vld [vmem:[#allocation4 + $0x58] ss:$0 sm:$0xff] }
  0x10   :  { %84 = vmatpush.msra.mxu0 %v610_v3 }
  0x12   :  { %85 = vmatpush.msra.mxu0 %v612_v4 }
  0x13   :  { %459 = vmatmul.msk.f32.vlgmr.msra.gmra.mxu0 %vm63_vm0, %v618_v6 }
  0x1b   :  { %460 = vmatmul.msk.f32.gmra.mxu0 %vm63_vm0, %v623_v7 }
  0x90   :  { %v87_v8 = vpop.f32.mrf.mxu0 }
  0x91   :  { %v88_v11 = vadd.f32 %v627_v9, %v87_v8 }
  0x98   :  { %v90_v10 = vpop.f32.mrf.mxu0 }
  0x99   :  { %v91_v12 = vadd.f32 %v627_v9, %v90_v10  ;;  %v581_v10 = vmov 32.0  }
  0x9b   :  { %97 = vrot.lane.b32.xlu0 %v91_v12, %s578_s0  ;;  %v483_v13 = vpack.i.bf16 %v88_v11, %v91_v12 }
  0x9d   :  { %484 = vrot.lane.b32.xlu2 %v483_v13, %s579_s1 }
  0xa3   :  { %95 = vrot.lane.b32.xlu0 %v88_v11, %s578_s0 }
  0xf7   :  { %v485_v14 = vpop.permute.xlu2 %484 }
  0xf8   :  { %v486_v15 = vunpack.i.l.bf16 %v485_v14  ;;  %v487_v16 = vunpack.i.h.bf16 %v485_v14 }
  0xfa   :  { %197 = vmatpush.msra.mxu2 %v486_v15  ;;  %473 = vmatpush.msra.mxu3 %v486_v15 }
  0xfc   :  { %198 = vmatpush.msra.mxu2 %v487_v16  ;;  %474 = vmatpush.msra.mxu3 %v487_v16 }
 0x10d   :  { %v98_v17 = vpop.permute.xlu0 %97 }
 0x10e   :  { %461 = vmatpush.xpose.msk.msra.mxu1 %vm63_vm0, %v98_v17 }
 0x115   :  { %v96_v18 = vpop.permute.xlu0 %95 }
 0x116   :  { %462 = vmatpush.xpose.msk.msra.mxu1 %vm63_vm0, %v96_v18 }
 0x119   :  { %463 = vmatmul.msk.f32.vlgmr.msra.gmra.mxu1 %vm63_vm0, %v88_v11 }
 0x121   :  { %464 = vmatmul.msk.f32.gmra.mxu1 %vm63_vm0, %v91_v12 }
 0x196   :  { %v124_v20 = vpop.f32.mrf.mxu1 }
 0x197   :  { %v125_v21 = vadd.f32 %v124_v20, %v53_v19 }
 0x199   :  { %v130_v22 = vmul.f32 1.442695, %v125_v21 }
 0x19b   :  { %504 = vpow2.f32 %v130_v22 }
 0x19e   :  { %v127_v24 = vpop.f32.mrf.mxu1 }
 0x19f   :  { %v128_v25 = vadd.f32 %v127_v24, %v54_v23 }
 0x1a1   :  { %v505_v26 = vpop.eup %504  ;;  %v132_v27 = vmul.f32 1.442695, %v128_v25 }
 0x1a2   :  { %v135_v28 = vsel %vm134_vm1, %v505_v26, 0.0 }
 0x1a3   :  { %506 = vpow2.f32 %v132_v27  ;;  %136 = vadd.xlane.f32.xlu1 %v135_v28 }
 0x1a9   :  { %v507_v29 = vpop.eup %506 }
 0x1aa   :  { %v138_v30 = vsel %vm134_vm1, %v507_v29, 0.0 }
 0x1ab   :  { %139 = vadd.xlane.f32.xlu1 %v138_v30 }
 0x216   :  { %v137_v31 = vpop.xlane.xlu1 %136 }
 0x217   :  { %508 = vrcp.f32 %v137_v31  ;;  %v152_v36 = vand.u32 2147483648, %v137_v31  ;;  %v150_v38 = vand.u32 2147483647, %v137_v31  ;;  %vm146_vm3 = vweird.f32 %v137_v31 }
 0x219   :  { %v153_v41 = vor.u32 1.1754944e-38, %v152_v36  ;;  %vm151_vm5 = vcmp.eq.f32.partialorder %v150_v38, 8.507059e+37 }
 0x21d   :  { %v509_v32 = vpop.eup %508 }
 0x21e   :  { %v142_v33 = vmul.f32 %v509_v32, %v137_v31  ;;  %v140_v34 = vpop.xlane.xlu1 %139  ;;  %vm147_vm2 = vweird.f32 %v509_v32 }
 0x21f   :  { %510 = vrcp.f32 %v140_v34  ;;  %vm148_vm4 = vmor %vm146_vm3, %vm147_vm2  ;;  %v166_v47 = vand.u32 2147483648, %v140_v34  ;;  %v164_v49 = vand.u32 2147483647, %v140_v34  ;;  %vm160_vm7 = vweird.f32 %v140_v34 }
 0x220   :  { %v143_v35 = vsub.f32 1.0, %v142_v33  ;;  %512 = vrcp.f32 %v581_v10 }
 0x221   :  { %v167_v51 = vor.u32 1.1754944e-38, %v166_v47  ;;  %vm165_vm9 = vcmp.eq.f32.partialorder %v164_v49, 8.507059e+37 }
 0x222   :  { %v144_v37 = vmul.f32 %v509_v32, %v143_v35 }
 0x224   :  { %v145_v39 = vadd.f32 %v509_v32, %v144_v37 }
 0x225   :  { %v511_v40 = vpop.eup %510 }
 0x226   :  { %v156_v42 = vmul.f32 %v511_v40, %v140_v34  ;;  %v149_v43 = vsel %vm148_vm4, %v509_v32, %v145_v39  ;;  %vm161_vm6 = vweird.f32 %v511_v40  ;;  %v513_v11 = vpop.eup %512 }
 0x227   :  { %v154_v44 = vsel %vm151_vm5, %v153_v41, %v149_v43  ;;  %vm162_vm8 = vmor %vm160_vm7, %vm161_vm6  ;;  %v215_v12 = vmul.f32 32.0, %v513_v11  ;;  %vm219_vm10 = vweird.f32 %v513_v11 }
 0x228   :  { %v157_v45 = vsub.f32 1.0, %v156_v42  ;;  %v169_v46 = vmul.f32 %v505_v26, %v154_v44 }
 0x229   :  { %v216_v13 = vsub.f32 1.0, %v215_v12 }
 0x22a   :  { %v158_v48 = vmul.f32 %v511_v40, %v157_v45  ;;  %465 = vmatmul.msk.f32.vlgmr.msra.gmra.mxu2 %vm134_vm1, %v169_v46  ;;  %v500_v46 = vld [vmem:[#allocation4 + $0x5a] ss:$0 sm:$0xff] }
 0x22b   :  { %v217_v14 = vmul.f32 %v513_v11, %v216_v13 }
 0x22c   :  { %v159_v50 = vadd.f32 %v511_v40, %v158_v48 }
 0x22d   :  { %v218_v15 = vadd.f32 %v513_v11, %v217_v14 }
 0x22e   :  { %v163_v52 = vsel %vm162_vm8, %v511_v40, %v159_v50  ;;  %v499_v40 = vld [vmem:[#allocation4 + $0x59] ss:$0 sm:$0xff] }
 0x22f   :  { %v168_v53 = vsel %vm165_vm9, %v167_v51, %v163_v52  ;;  %v657_v16 = vsel %vm219_vm10, %v513_v11, %v218_v15 }
 0x230   :  { %v170_v54 = vmul.f32 %v507_v29, %v168_v53 }
 0x232   :  { %466 = vmatmul.msk.f32.vlgmr.msra.gmra.mxu3 %vm134_vm1, %v170_v54 }
 0x2ad   :  { %v200_v55 = vpop.f32.mrf.mxu2 }
 0x2ae   :  { %v206_v56 = vadd.f32 %v200_v55, %v618_v6 }
 0x2b0   :  { %v208_v57 = vsel %vm63_vm0, %v206_v56, 0.0  ;;  %v223_v58 = vmul.f32 %v206_v56, %v206_v56 }
 0x2b1   :  { %209 = vadd.xlane.f32.xlu2 %v208_v57 }
 0x2b2   :  { %v225_v59 = vsel %vm63_vm0, %v223_v58, 0.0 }
 0x2b3   :  { %226 = vadd.xlane.f32.xlu0 %v225_v59 }
 0x2b5   :  { %v203_v60 = vpop.f32.mrf.mxu3 }
 0x2b6   :  { %v643_v61 = vadd.f32 %v203_v60, %v623_v7 }
 0x2b8   :  { %v211_v62 = vsel %vm63_vm0, %v643_v61, 0.0  ;;  %v224_v63 = vmul.f32 %v643_v61, %v643_v61 }
 0x2b9   :  { %212 = vadd.xlane.f32.xlu1 %v211_v62 }
 0x2ba   :  { %v228_v8 = vsel %vm63_vm0, %v224_v63, 0.0 }
 0x2c1   :  { %229 = vadd.xlane.f32.xlu1 %v228_v8 }
 0x2c9   :  { %494 = vrot.lane.b32.xlu2 %v493_v5, %s580_s21 }
 0x2da   :  { %489 = vrot.lane.b32.xlu1 %v488_v2, %s580_s21 }
 0x2e2   :  { %286 = vrot.lane.b32.xlu1 %v627_v9, %s580_s21 }
 0x324   :  { %v210_v17 = vpop.xlane.xlu2 %209 }
 0x325   :  { %v221_v3 = vmul.f32 %v657_v16, %v210_v17 }
 0x326   :  { %v227_v4 = vpop.xlane.xlu0 %226 }
 0x327   :  { %v233_v5 = vmul.f32 %v221_v3, %v221_v3  ;;  %v231_v0 = vmul.f32 %v227_v4, %v657_v16  ;;  %v237_v36 = vsub.f32 %v206_v56, %v221_v3 }
 0x329   :  { %v235_v1 = vsub.f32 %v231_v0, %v233_v5 }
 0x32b   :  { %v239_v2 = vadd.f32 1e-05, %v235_v1 }
 0x32c   :  { %v213_v9 = vpop.xlane.xlu1 %212  ;;  %v495_v38 = vpop.permute.xlu2 %494 }
 0x32d   :  { %514 = vrsqrt.f32 %v239_v2  ;;  %v222_v18 = vmul.f32 %v657_v16, %v213_v9  ;;  %vm247_vm12 = vweird.f32 %v239_v2  ;;  %v496_v44 = vunpack.i.l.bf16 %v495_v38 }
 0x32e   :  { %v497_v49 = vunpack.i.h.bf16 %v495_v38 }
 0x32f   :  { %v234_v22 = vmul.f32 %v222_v18, %v222_v18  ;;  %v238_v48 = vsub.f32 %v643_v61, %v222_v18 }
 0x333   :  { %v515_v19 = vpop.eup %514 }
 0x334   :  { %v230_v20 = vpop.xlane.xlu1 %229  ;;  %v242_v21 = vmul.f32 %v515_v19, %v239_v2  ;;  %vm248_vm11 = vweird.f32 %v515_v19 }
 0x335   :  { %v232_v23 = vmul.f32 %v230_v20, %v657_v16  ;;  %vm249_vm13 = vmor %vm247_vm12, %vm248_vm11 }
 0x336   :  { %v243_v25 = vmul.f32 %v515_v19, %v242_v21 }
 0x337   :  { %v236_v24 = vsub.f32 %v232_v23, %v234_v22 }
 0x338   :  { %v244_v27 = vmul.f32 0.5, %v243_v25  ;;  %v51_v25 = vld [vmem:[#allocation4 + $0x30] sm:$0xff] }
 0x339   :  { %v240_v26 = vadd.f32 1e-05, %v236_v24  ;;  %v52_v24 = vld [vmem:[#allocation4 + $0x38] sm:$0xff] }
 0x33a   :  { %v245_v29 = vsub.f32 1.5, %v244_v27  ;;  %444 = vmatpush.msrb.mxu1 %v52_v24 }
 0x33b   :  { %516 = vrsqrt.f32 %v240_v26  ;;  %vm257_vm15 = vweird.f32 %v240_v26 }
 0x33c   :  { %v246_v32 = vmul.f32 %v515_v19, %v245_v29  ;;  %445 = vmatpush.msrb.mxu1 %v51_v25 }
 0x33e   :  { %v250_v34 = vsel %vm249_vm13, %v515_v19, %v246_v32 }
 0x33f   :  { %v261_v39 = vmul.f32 %v250_v34, %v237_v36 }
 0x341   :  { %v517_v28 = vpop.eup %516  ;;  %v264_v45 = vmul.f32 %v499_v40, %v261_v39 }
 0x342   :  { %v252_v30 = vmul.f32 %v517_v28, %v240_v26  ;;  %vm258_vm14 = vweird.f32 %v517_v28 }
 0x343   :  { %vm259_vm2 = vmor %vm257_vm15, %vm258_vm14  ;;  %v267_v50 = vadd.f32 %v500_v46, %v264_v45 }
 0x344   :  { %v253_v31 = vmul.f32 %v517_v28, %v252_v30  ;;  %v49_v30 = vld [vmem:[#allocation4 + $0x20] sm:$0xff] }
 0x346   :  { %v254_v33 = vmul.f32 0.5, %v253_v31 }
 0x348   :  { %v255_v35 = vsub.f32 1.5, %v254_v33 }
 0x34a   :  { %v256_v41 = vmul.f32 %v517_v28, %v255_v35 }
 0x34c   :  { %v490_v37 = vpop.permute.xlu1 %489  ;;  %v260_v47 = vsel %vm259_vm2, %v517_v28, %v256_v41  ;;  %v50_v28 = vld [vmem:[#allocation4 + $0x28] sm:$0xff] }
 0x34d   :  { %v491_v42 = vunpack.i.l.bf16 %v490_v37  ;;  %v492_v43 = vunpack.i.h.bf16 %v490_v37  ;;  %v262_v51 = vmul.f32 %v260_v47, %v238_v48  ;;  %446 = vmatpush.msrb.mxu1 %v50_v28  ;;  %v502_v47 = vld [vmem:[#allocation4 + $0x5c] ss:$0 sm:$0xff] }
 0x34f   :  { %307 = vmatpush.msrb.mxu3 %v491_v42  ;;  %338 = vmatpush.msrb.mxu2 %v491_v42  ;;  %v265_v52 = vmul.f32 %v499_v40, %v262_v51  ;;  %v501_v42 = vld [vmem:[#allocation4 + $0x5b] ss:$0 sm:$0xff]  ;;  %v55_v51 = vld [vmem:[#allocation4 + $0x50] sm:$0xff] }
 0x350   :  { %447 = vmatpush.msrb.mxu1 %v49_v30 }
 0x351   :  { %308 = vmatpush.msrb.mxu3 %v492_v43  ;;  %339 = vmatpush.msrb.mxu2 %v492_v43  ;;  %v268_v53 = vadd.f32 %v500_v46, %v265_v52 }
 0x353   :  { %309 = vmatpush.msrb.mxu3 %v496_v44  ;;  %340 = vmatpush.msrb.mxu2 %v496_v44 }
 0x354   :  { %v287_v54 = vpop.permute.xlu1 %286 }
 0x355   :  { %310 = vmatpush.msrb.mxu3 %v497_v49  ;;  %341 = vmatpush.msrb.mxu2 %v497_v49 }
 0x356   :  { %467 = vmatmul.msk.f32.vlgmr.msrb.gmra.mxu3 %vm63_vm0, %v267_v50 }
 0x35e   :  { %468 = vmatmul.msk.f32.gmra.mxu3 %vm63_vm0, %v268_v53  ;;  %v503_v53 = vld [vmem:[#allocation4 + $0x5d] ss:$0 sm:$0xff] }
 0x3d9   :  { %v312_v55 = vpop.f32.mrf.mxu3 }
 0x3da   :  { %v313_v56 = vadd.f32 %v312_v55, %v287_v54 }
 0x3dc   :  { %v318_v57 = vmax.f32 %v313_v56, 0.0 }
 0x3de   :  { %469 = vmatmul.msk.f32.vlgmr.msrb.gmra.mxu2 %vm63_vm0, %v318_v57 }
 0x3e1   :  { %v315_v58 = vpop.f32.mrf.mxu3 }
 0x3e2   :  { %v316_v59 = vadd.f32 %v315_v58, %v287_v54 }
 0x3e4   :  { %v319_v60 = vmax.f32 %v316_v59, 0.0 }
 0x3e6   :  { %470 = vmatmul.msk.f32.gmra.mxu2 %vm63_vm0, %v319_v60 }
 0x461   :  { %v343_v61 = vpop.f32.mrf.mxu2 }
 0x462   :  { %v344_v62 = vadd.f32 %v343_v61, %v287_v54 }
 0x464   :  { %v349_v63 = vadd.f32 %v344_v62, %v618_v6 }
 0x466   :  { %v351_v8 = vsel %vm63_vm0, %v349_v63, 0.0  ;;  %v359_v10 = vmul.f32 %v349_v63, %v349_v63 }
 0x467   :  { %352 = vadd.xlane.f32.xlu1 %v351_v8 }
 0x468   :  { %v361_v11 = vsel %vm63_vm0, %v359_v10, 0.0 }
 0x469   :  { %v346_v12 = vpop.f32.mrf.mxu2  ;;  %362 = vadd.xlane.f32.xlu2 %v361_v11 }
 0x46a   :  { %v347_v13 = vadd.f32 %v346_v12, %v287_v54 }
 0x46c   :  { %v350_v14 = vadd.f32 %v347_v13, %v623_v7 }
 0x46e   :  { %v354_v15 = vsel %vm63_vm0, %v350_v14, 0.0  ;;  %v360_v17 = vmul.f32 %v350_v14, %v350_v14 }
 0x46f   :  { %355 = vadd.xlane.f32.xlu0 %v354_v15 }
 0x470   :  { %v364_v3 = vsel %vm63_vm0, %v360_v17, 0.0 }
 0x477   :  { %365 = vadd.xlane.f32.xlu0 %v364_v3 }
 0x4da   :  { %v353_v4 = vpop.xlane.xlu1 %352 }
 0x4db   :  { %v357_v6 = vmul.f32 %v353_v4, %v657_v16 }
 0x4dc   :  { %v363_v5 = vpop.xlane.xlu2 %362 }
 0x4dd   :  { %v369_v0 = vmul.f32 %v357_v6, %v357_v6  ;;  %v367_v1 = vmul.f32 %v363_v5, %v657_v16  ;;  %v373_v39 = vsub.f32 %v349_v63, %v357_v6 }
 0x4df   :  { %v371_v2 = vsub.f32 %v367_v1, %v369_v0 }
 0x4e1   :  { %v375_v9 = vadd.f32 1e-05, %v371_v2 }
 0x4e2   :  { %v356_v18 = vpop.xlane.xlu0 %355 }
 0x4e3   :  { %518 = vrsqrt.f32 %v375_v9  ;;  %v358_v7 = vmul.f32 %v356_v18, %v657_v16  ;;  %vm383_vm4 = vweird.f32 %v375_v9 }
 0x4e5   :  { %v370_v22 = vmul.f32 %v358_v7, %v358_v7  ;;  %v374_v41 = vsub.f32 %v350_v14, %v358_v7 }
 0x4e9   :  { %v519_v19 = vpop.eup %518 }
 0x4ea   :  { %v378_v20 = vmul.f32 %v519_v19, %v375_v9  ;;  %v366_v21 = vpop.xlane.xlu0 %365  ;;  %vm384_vm3 = vweird.f32 %v519_v19 }
 0x4eb   :  { %v368_v23 = vmul.f32 %v366_v21, %v657_v16  ;;  %vm385_vm5 = vmor %vm383_vm4, %vm384_vm3 }
 0x4ec   :  { %v379_v27 = vmul.f32 %v519_v19, %v378_v20 }
 0x4ed   :  { %v372_v26 = vsub.f32 %v368_v23, %v370_v22 }
 0x4ee   :  { %v380_v31 = vmul.f32 0.5, %v379_v27 }
 0x4ef   :  { %v376_v29 = vadd.f32 1e-05, %v372_v26 }
 0x4f0   :  { %v381_v32 = vsub.f32 1.5, %v380_v31 }
 0x4f1   :  { %520 = vrsqrt.f32 %v376_v29  ;;  %vm393_vm7 = vweird.f32 %v376_v29 }
 0x4f2   :  { %v382_v36 = vmul.f32 %v519_v19, %v381_v32 }
 0x4f4   :  { %v386_v38 = vsel %vm385_vm5, %v519_v19, %v382_v36 }
 0x4f5   :  { %v397_v43 = vmul.f32 %v386_v38, %v373_v39 }
 0x4f7   :  { %v521_v33 = vpop.eup %520  ;;  %v400_v48 = vmul.f32 %v501_v42, %v397_v43 }
 0x4f8   :  { %v388_v34 = vmul.f32 %v521_v33, %v376_v29  ;;  %vm394_vm6 = vweird.f32 %v521_v33 }
 0x4f9   :  { %vm395_vm8 = vmor %vm393_vm7, %vm394_vm6  ;;  %v403_v50 = vadd.f32 %v502_v47, %v400_v48 }
 0x4fa   :  { %v389_v35 = vmul.f32 %v521_v33, %v388_v34 }
 0x4fc   :  { %v390_v16 = vmul.f32 0.5, %v389_v35 }
 0x4fe   :  { %v391_v37 = vsub.f32 1.5, %v390_v16 }
 0x500   :  { %v392_v40 = vmul.f32 %v521_v33, %v391_v37 }
 0x502   :  { %v396_v44 = vsel %vm395_vm8, %v521_v33, %v392_v40 }
 0x503   :  { %v398_v45 = vmul.f32 %v396_v44, %v374_v41 }
 0x505   :  { %v401_v46 = vmul.f32 %v501_v42, %v398_v45 }
 0x507   :  { %v404_v49 = vadd.f32 %v502_v47, %v401_v46 }
 0x509   :  { %422 = vmatpush.msrb.mxu0 %v404_v49 }
 0x50b   :  { %423 = vmatpush.msrb.mxu0 %v403_v50 }
 0x50c   :  { %471 = vmatmul.msk.f32.vlgmr.msrb.gmra.mxu0 %vm134_vm1, %v55_v51 }
 0x589   :  { %v425_v52 = vpop.f32.mrf.mxu0 }
 0x58a   :  { %472 = vmatmul.msk.f32.vlgmr.msrb.gmra.mxu1 %vm63_vm0, %v425_v52 }
 0x607   :  { %v449_v54 = vpop.f32.mrf.mxu1 }
 0x608   :  { %v450_v55 = vadd.f32 %v503_v53, %v449_v54 }
 0x60a   :  { %452 = vst [vmem:[%s685_s2] sm:$0xff] %v450_v55 }
 0x60b   :  { %457 = vsyncpa [#allocation3], 1 }
 0x60c   :  { %458 = vsyncpa [#allocation5], 1 }

</bundles_post_ra>
